<compile_context>
chip_gen: v7x
topology: tpu7x:2x2x1
jax: 0.10.0
libtpu: 0.0.40
codegen_flags: <defaults>
</compile_context>

<pallas_src>
import functools

import jax
import jax.numpy as jnp
from jax.experimental import pallas as pl
from jax.experimental.pallas import tpu as pltpu


def _residual_conv_kernel(x_ref, w_ref, b_ref, m_ref, o_ref, *, N, H, W, KH, KW):
    """Fused KHxKW 'same' conv + bias + identity skip (sum mode).

    x_ref: (N, C_in, H*W)        flattened NCHW activations (lane-dense rows)
    w_ref: (KH*KW, C_out, C_in)  tap-major conv weights (shared across batch)
    b_ref: (C_out, H*W)          bias, pre-broadcast along lanes
    m_ref: (4, H*W)              elementary boundary masks in {0., 1.}:
                                 [row>=1, row<=H-2, col>=1, col<=W-2]
    o_ref: (N, C_out, H*W)       output, same layout as x_ref
    """
    HW = H * W
    f32 = jnp.float32

    # Elementary boundary masks (precomputed in the wrapper -> no in-kernel
    # iota / integer div / mod).
    m = m_ref[...].astype(f32)                    # (4, HW)
    m_top, m_bot = m[0:1, :], m[1:2, :]           # row >= 1 , row <= H-2
    m_left, m_right = m[2:3, :], m[3:4, :]        # col >= 1 , col <= W-2

    # Per-tap (lane shift, combined mask): built once, shared across the batch
    # loop.  Only corner taps need one extra (1, HW) multiply.
    taps = []
    for kh in range(KH):
        for kw in range(KW):
            dh, dw = kh - KH // 2, kw - KW // 2
            d = dh * W + dw                       # shifted[:, p] = x[:, p + d]
            mm = None
            if dh < 0:
                mm = m_top
            elif dh > 0:
                mm = m_bot
            if dw < 0:
                mm = m_left if mm is None else mm * m_left
            elif dw > 0:
                mm = m_right if mm is None else mm * m_right
            taps.append(((-d) % HW, mm))

    bias = b_ref[...].astype(f32)                 # (C_out, HW)

    # Tiny static batch loop (one grid step, no per-step overhead at this size).
    for n in range(N):
        xn = x_ref[n].astype(f32)                 # (C_in, HW)
        acc = bias + xn                           # bias + identity skip (sum)
        for t, (shift, mm) in enumerate(taps):
            # XLU lane rotation implements the spatial shift of this tap.
            xs = xn if shift == 0 else pltpu.roll(xn, shift=shift, axis=1)
            if mm is not None:
                xs = xs * mm                      # zero 'same' padding
            # Per-tap MXU matmul with f32 accumulation:
            #   (C_out, C_in) @ (C_in, HW) -- K is batch-independent.
            acc = acc + jnp.dot(w_ref[t].astype(f32), xs,
                                preferred_element_type=f32)
        o_ref[n] = acc.astype(o_ref.dtype)


@jax.jit
def residual_cube_forward(x_nchw, w_oihw, bias):
    """y = conv3x3_same(x, w, b) + x   (ResidualCube.forward with sum skip).

    x_nchw: (N, C_in, H, W) float32
    w_oihw: (C_out, C_in, KH, KW) float32  (PyTorch layout)
    bias  : (C_out,) float32
    returns (N, C_out, H, W) float32
    """
    N, C_in, H, W = x_nchw.shape
    C_out, C_in2, KH, KW = w_oihw.shape
    assert C_in2 == C_in
    assert C_out == C_in, "identity-sum skip requires out_channels == in_channels"
    HW = H * W

    # Activations: free contiguous reshape only -- no transposes, no padding.
    x3 = x_nchw.reshape(N, C_in, HW)

    # Tap-major weights (KH*KW, C_out, C_in); tap order matches the kernel's
    # (kh, kw) loop.  Contraction dim is C_in only (no block-diagonal zeros).
    w_taps = jnp.transpose(w_oihw, (2, 3, 0, 1)).reshape(KH * KW, C_out, C_in)

    # Bias pre-broadcast to a lane-dense block (no 1-lane masked load).
    b_b = jnp.broadcast_to(bias.astype(jnp.float32)[:, None], (C_out, HW))

    # Four elementary boundary masks over flattened spatial positions,
    # computed once in the wrapper (kernel does no iota / div / mod).
    pos = jnp.arange(HW, dtype=jnp.int32)
    row, col = pos // W, pos % W
    masks = jnp.stack([row >= 1, row <= H - 2,
                       col >= 1, col <= W - 2]).astype(jnp.float32)   # (4, HW)

    kernel = functools.partial(_residual_conv_kernel,
                               N=N, H=H, W=W, KH=KH, KW=KW)

    out3 = pl.pallas_call(
        kernel,
        out_shape=jax.ShapeDtypeStruct((N, C_out, HW), x_nchw.dtype),
        grid_spec=pltpu.PrefetchScalarGridSpec(
            num_scalar_prefetch=0,
            grid=(1,),
            in_specs=[
                pl.BlockSpec((N, C_in, HW), lambda i: (0, 0, 0)),
                pl.BlockSpec((KH * KW, C_out, C_in), lambda i: (0, 0, 0)),
                pl.BlockSpec((C_out, HW), lambda i: (0, 0)),
                pl.BlockSpec((4, HW), lambda i: (0, 0)),
            ],
            out_specs=pl.BlockSpec((N, C_out, HW), lambda i: (0, 0, 0)),
        ),
        compiler_params=pltpu.CompilerParams(
            dimension_semantics=("arbitrary",)),
    )(x3, w_taps, b_b, masks)

    # Free contiguous reshape back to NCHW.
    return out3.reshape(N, C_out, H, W)


def _reference(x_nchw, w_oihw, bias):
    """Pure-JAX reference (XLA conv) for correctness checking."""
    y = jax.lax.conv_general_dilated(
        x_nchw, w_oihw, window_strides=(1, 1), padding="SAME",
        dimension_numbers=("NCHW", "OIHW", "NCHW"),
        precision=jax.lax.Precision.HIGHEST)
    return y + bias[None, :, None, None] + x_nchw


if __name__ == "__main__":
    # Small shapes consistent with the module: batch=2, channels=4, spatial=16.
    N, C, H, W = 2, 4, 16, 16
    key = jax.random.PRNGKey(0)
    kx, kw, kb = jax.random.split(key, 3)

    x = jax.random.normal(kx, (N, C, H, W), dtype=jnp.float32)
    # Deterministic parameter init (Conv2d(C, C, kernel_size=3, padding=1)).
    w = jax.random.normal(kw, (C, C, 3, 3), dtype=jnp.float32) * 0.1
    b = jax.random.normal(kb, (C,), dtype=jnp.float32) * 0.1

    y = residual_cube_forward(x, w, b)
    y = jax.block_until_ready(y)

    y_ref = jax.block_until_ready(_reference(x, w, b))
    assert y.shape == (N, C, H, W)
    assert jnp.allclose(y, y_ref, atol=1e-4, rtol=1e-4)

    print("KERNEL_OK")
</pallas_src>

<mosaic_0001>
module attributes {stable_mosaic.version = 11 : i64} {
  func.func @_residual_conv_kernel(%arg0: i32, %arg1: memref<2x4x256xf32, #tpu.memory_space<vmem>>, %arg2: memref<9x4x4xf32, #tpu.memory_space<vmem>>, %arg3: memref<4x256xf32, #tpu.memory_space<vmem>>, %arg4: memref<4x256xf32, #tpu.memory_space<vmem>>, %arg5: memref<2x4x256xf32, #tpu.memory_space<vmem>>) attributes {dimension_semantics = [#tpu.dimension_semantics<arbitrary>], iteration_bounds = array<i64: 1>, scalar_prefetch = 0 : i64, scratch_operands = 0 : i64, tpu.core_type = #tpu.core_type<tc>, window_params = [{pipeline_mode = #tpu.pipeline_mode<synchronous>, transform_indices = @transform_0, window_bounds = array<i64: 2, 4, 256>}, {pipeline_mode = #tpu.pipeline_mode<synchronous>, transform_indices = @transform_1, window_bounds = array<i64: 9, 4, 4>}, {pipeline_mode = #tpu.pipeline_mode<synchronous>, transform_indices = @transform_2, window_bounds = array<i64: 4, 256>}, {pipeline_mode = #tpu.pipeline_mode<synchronous>, transform_indices = @transform_3, window_bounds = array<i64: 4, 256>}, {pipeline_mode = #tpu.pipeline_mode<synchronous>, transform_indices = @transform_4, window_bounds = array<i64: 2, 4, 256>}]} {
    %c0 = arith.constant 0 : index
    %c0_0 = arith.constant 0 : index
    %0 = vector.load %arg4[%c0, %c0_0] : memref<4x256xf32, #tpu.memory_space<vmem>>, vector<4x256xf32>
    %1 = vector.extract_strided_slice %0 {offsets = [0, 0], sizes = [1, 256], strides = [1, 1]} : vector<4x256xf32> to vector<1x256xf32>
    %2 = vector.extract_strided_slice %0 {offsets = [1, 0], sizes = [1, 256], strides = [1, 1]} : vector<4x256xf32> to vector<1x256xf32>
    %3 = vector.extract_strided_slice %0 {offsets = [2, 0], sizes = [1, 256], strides = [1, 1]} : vector<4x256xf32> to vector<1x256xf32>
    %4 = vector.extract_strided_slice %0 {offsets = [3, 0], sizes = [1, 256], strides = [1, 1]} : vector<4x256xf32> to vector<1x256xf32>
    %5 = arith.mulf %1, %3 : vector<1x256xf32>
    %6 = arith.mulf %1, %4 : vector<1x256xf32>
    %7 = arith.mulf %2, %3 : vector<1x256xf32>
    %8 = arith.mulf %2, %4 : vector<1x256xf32>
    %c0_1 = arith.constant 0 : index
    %c0_2 = arith.constant 0 : index
    %9 = vector.load %arg3[%c0_1, %c0_2] : memref<4x256xf32, #tpu.memory_space<vmem>>, vector<4x256xf32>
    %c0_3 = arith.constant 0 : index
    %c0_4 = arith.constant 0 : index
    %c0_5 = arith.constant 0 : index
    %10 = vector.load %arg1[%c0_3, %c0_4, %c0_5] : memref<2x4x256xf32, #tpu.memory_space<vmem>>, vector<1x4x256xf32>
    %11 = vector.shape_cast %10 : vector<1x4x256xf32> to vector<4x256xf32>
    %12 = arith.addf %9, %11 : vector<4x256xf32>
    %c17_i32 = arith.constant 17 : i32
    %13 = tpu.dynamic_rotate %11 by %c17_i32 dim 1 : vector<4x256xf32>, i32 -> vector<4x256xf32>
    %14 = vector.broadcast %5 : vector<1x256xf32> to vector<4x256xf32>
    %15 = arith.mulf %13, %14 : vector<4x256xf32>
    %c0_6 = arith.constant 0 : index
    %c0_7 = arith.constant 0 : index
    %c0_8 = arith.constant 0 : index
    %16 = vector.load %arg2[%c0_6, %c0_7, %c0_8] : memref<9x4x4xf32, #tpu.memory_space<vmem>>, vector<1x4x4xf32>
    %17 = vector.shape_cast %16 : vector<1x4x4xf32> to vector<4x4xf32>
    %cst = arith.constant dense<0.000000e+00> : vector<4x256xf32>
    %18 = tpu.matmul %17, %15, %cst {dimension_numbers = #tpu.dot_dimension_numbers<[1], [0], [0], [1], [0, 0, 1, 1], [], []>} : vector<4x4xf32>, vector<4x256xf32>, vector<4x256xf32> -> vector<4x256xf32>
    %19 = arith.addf %12, %18 : vector<4x256xf32>
    %c16_i32 = arith.constant 16 : i32
    %20 = tpu.dynamic_rotate %11 by %c16_i32 dim 1 : vector<4x256xf32>, i32 -> vector<4x256xf32>
    %21 = vector.broadcast %1 : vector<1x256xf32> to vector<4x256xf32>
    %22 = arith.mulf %20, %21 : vector<4x256xf32>
    %c1 = arith.constant 1 : index
    %c0_9 = arith.constant 0 : index
    %c0_10 = arith.constant 0 : index
    %23 = vector.load %arg2[%c1, %c0_9, %c0_10] : memref<9x4x4xf32, #tpu.memory_space<vmem>>, vector<1x4x4xf32>
    %24 = vector.shape_cast %23 : vector<1x4x4xf32> to vector<4x4xf32>
    %cst_11 = arith.constant dense<0.000000e+00> : vector<4x256xf32>
    %25 = tpu.matmul %24, %22, %cst_11 {dimension_numbers = #tpu.dot_dimension_numbers<[1], [0], [0], [1], [0, 0, 1, 1], [], []>} : vector<4x4xf32>, vector<4x256xf32>, vector<4x256xf32> -> vector<4x256xf32>
    %26 = arith.addf %19, %25 : vector<4x256xf32>
    %c15_i32 = arith.constant 15 : i32
    %27 = tpu.dynamic_rotate %11 by %c15_i32 dim 1 : vector<4x256xf32>, i32 -> vector<4x256xf32>
    %28 = vector.broadcast %6 : vector<1x256xf32> to vector<4x256xf32>
    %29 = arith.mulf %27, %28 : vector<4x256xf32>
    %c2 = arith.constant 2 : index
    %c0_12 = arith.constant 0 : index
    %c0_13 = arith.constant 0 : index
    %30 = vector.load %arg2[%c2, %c0_12, %c0_13] : memref<9x4x4xf32, #tpu.memory_space<vmem>>, vector<1x4x4xf32>
    %31 = vector.shape_cast %30 : vector<1x4x4xf32> to vector<4x4xf32>
    %cst_14 = arith.constant dense<0.000000e+00> : vector<4x256xf32>
    %32 = tpu.matmul %31, %29, %cst_14 {dimension_numbers = #tpu.dot_dimension_numbers<[1], [0], [0], [1], [0, 0, 1, 1], [], []>} : vector<4x4xf32>, vector<4x256xf32>, vector<4x256xf32> -> vector<4x256xf32>
    %33 = arith.addf %26, %32 : vector<4x256xf32>
    %c1_i32 = arith.constant 1 : i32
    %34 = tpu.dynamic_rotate %11 by %c1_i32 dim 1 : vector<4x256xf32>, i32 -> vector<4x256xf32>
    %35 = vector.broadcast %3 : vector<1x256xf32> to vector<4x256xf32>
    %36 = arith.mulf %34, %35 : vector<4x256xf32>
    %c3 = arith.constant 3 : index
    %c0_15 = arith.constant 0 : index
    %c0_16 = arith.constant 0 : index
    %37 = vector.load %arg2[%c3, %c0_15, %c0_16] : memref<9x4x4xf32, #tpu.memory_space<vmem>>, vector<1x4x4xf32>
    %38 = vector.shape_cast %37 : vector<1x4x4xf32> to vector<4x4xf32>
    %cst_17 = arith.constant dense<0.000000e+00> : vector<4x256xf32>
    %39 = tpu.matmul %38, %36, %cst_17 {dimension_numbers = #tpu.dot_dimension_numbers<[1], [0], [0], [1], [0, 0, 1, 1], [], []>} : vector<4x4xf32>, vector<4x256xf32>, vector<4x256xf32> -> vector<4x256xf32>
    %40 = arith.addf %33, %39 : vector<4x256xf32>
    %c4 = arith.constant 4 : index
    %c0_18 = arith.constant 0 : index
    %c0_19 = arith.constant 0 : index
    %41 = vector.load %arg2[%c4, %c0_18, %c0_19] : memref<9x4x4xf32, #tpu.memory_space<vmem>>, vector<1x4x4xf32>
    %42 = vector.shape_cast %41 : vector<1x4x4xf32> to vector<4x4xf32>
    %cst_20 = arith.constant dense<0.000000e+00> : vector<4x256xf32>
    %43 = tpu.matmul %42, %11, %cst_20 {dimension_numbers = #tpu.dot_dimension_numbers<[1], [0], [0], [1], [0, 0, 1, 1], [], []>} : vector<4x4xf32>, vector<4x256xf32>, vector<4x256xf32> -> vector<4x256xf32>
    %44 = arith.addf %40, %43 : vector<4x256xf32>
    %c255_i32 = arith.constant 255 : i32
    %45 = tpu.dynamic_rotate %11 by %c255_i32 dim 1 : vector<4x256xf32>, i32 -> vector<4x256xf32>
    %46 = vector.broadcast %4 : vector<1x256xf32> to vector<4x256xf32>
    %47 = arith.mulf %45, %46 : vector<4x256xf32>
    %c5 = arith.constant 5 : index
    %c0_21 = arith.constant 0 : index
    %c0_22 = arith.constant 0 : index
    %48 = vector.load %arg2[%c5, %c0_21, %c0_22] : memref<9x4x4xf32, #tpu.memory_space<vmem>>, vector<1x4x4xf32>
    %49 = vector.shape_cast %48 : vector<1x4x4xf32> to vector<4x4xf32>
    %cst_23 = arith.constant dense<0.000000e+00> : vector<4x256xf32>
    %50 = tpu.matmul %49, %47, %cst_23 {dimension_numbers = #tpu.dot_dimension_numbers<[1], [0], [0], [1], [0, 0, 1, 1], [], []>} : vector<4x4xf32>, vector<4x256xf32>, vector<4x256xf32> -> vector<4x256xf32>
    %51 = arith.addf %44, %50 : vector<4x256xf32>
    %c241_i32 = arith.constant 241 : i32
    %52 = tpu.dynamic_rotate %11 by %c241_i32 dim 1 : vector<4x256xf32>, i32 -> vector<4x256xf32>
    %53 = vector.broadcast %7 : vector<1x256xf32> to vector<4x256xf32>
    %54 = arith.mulf %52, %53 : vector<4x256xf32>
    %c6 = arith.constant 6 : index
    %c0_24 = arith.constant 0 : index
    %c0_25 = arith.constant 0 : index
    %55 = vector.load %arg2[%c6, %c0_24, %c0_25] : memref<9x4x4xf32, #tpu.memory_space<vmem>>, vector<1x4x4xf32>
    %56 = vector.shape_cast %55 : vector<1x4x4xf32> to vector<4x4xf32>
    %cst_26 = arith.constant dense<0.000000e+00> : vector<4x256xf32>
    %57 = tpu.matmul %56, %54, %cst_26 {dimension_numbers = #tpu.dot_dimension_numbers<[1], [0], [0], [1], [0, 0, 1, 1], [], []>} : vector<4x4xf32>, vector<4x256xf32>, vector<4x256xf32> -> vector<4x256xf32>
    %58 = arith.addf %51, %57 : vector<4x256xf32>
    %c240_i32 = arith.constant 240 : i32
    %59 = tpu.dynamic_rotate %11 by %c240_i32 dim 1 : vector<4x256xf32>, i32 -> vector<4x256xf32>
    %60 = vector.broadcast %2 : vector<1x256xf32> to vector<4x256xf32>
    %61 = arith.mulf %59, %60 : vector<4x256xf32>
    %c7 = arith.constant 7 : index
    %c0_27 = arith.constant 0 : index
    %c0_28 = arith.constant 0 : index
    %62 = vector.load %arg2[%c7, %c0_27, %c0_28] : memref<9x4x4xf32, #tpu.memory_space<vmem>>, vector<1x4x4xf32>
    %63 = vector.shape_cast %62 : vector<1x4x4xf32> to vector<4x4xf32>
    %cst_29 = arith.constant dense<0.000000e+00> : vector<4x256xf32>
    %64 = tpu.matmul %63, %61, %cst_29 {dimension_numbers = #tpu.dot_dimension_numbers<[1], [0], [0], [1], [0, 0, 1, 1], [], []>} : vector<4x4xf32>, vector<4x256xf32>, vector<4x256xf32> -> vector<4x256xf32>
    %65 = arith.addf %58, %64 : vector<4x256xf32>
    %c239_i32 = arith.constant 239 : i32
    %66 = tpu.dynamic_rotate %11 by %c239_i32 dim 1 : vector<4x256xf32>, i32 -> vector<4x256xf32>
    %67 = vector.broadcast %8 : vector<1x256xf32> to vector<4x256xf32>
    %68 = arith.mulf %66, %67 : vector<4x256xf32>
    %c8 = arith.constant 8 : index
    %c0_30 = arith.constant 0 : index
    %c0_31 = arith.constant 0 : index
    %69 = vector.load %arg2[%c8, %c0_30, %c0_31] : memref<9x4x4xf32, #tpu.memory_space<vmem>>, vector<1x4x4xf32>
    %70 = vector.shape_cast %69 : vector<1x4x4xf32> to vector<4x4xf32>
    %cst_32 = arith.constant dense<0.000000e+00> : vector<4x256xf32>
    %71 = tpu.matmul %70, %68, %cst_32 {dimension_numbers = #tpu.dot_dimension_numbers<[1], [0], [0], [1], [0, 0, 1, 1], [], []>} : vector<4x4xf32>, vector<4x256xf32>, vector<4x256xf32> -> vector<4x256xf32>
    %72 = arith.addf %65, %71 : vector<4x256xf32>
    %c0_33 = arith.constant 0 : index
    %c0_34 = arith.constant 0 : index
    %c0_35 = arith.constant 0 : index
    %73 = vector.load %arg5[%c0_33, %c0_34, %c0_35] : memref<2x4x256xf32, #tpu.memory_space<vmem>>, vector<1x4x256xf32>
    %74 = vector.shape_cast %73 : vector<1x4x256xf32> to vector<4x256xf32>
    %75 = vector.shape_cast %72 : vector<4x256xf32> to vector<1x4x256xf32>
    tpu.vector_store %arg5[%c0_33, %c0_34, %c0_35], %75 {strides = array<i32>} : memref<2x4x256xf32, #tpu.memory_space<vmem>>, vector<1x4x256xf32>,
    %c1_36 = arith.constant 1 : index
    %c0_37 = arith.constant 0 : index
    %c0_38 = arith.constant 0 : index
    %76 = vector.load %arg1[%c1_36, %c0_37, %c0_38] : memref<2x4x256xf32, #tpu.memory_space<vmem>>, vector<1x4x256xf32>
    %77 = vector.shape_cast %76 : vector<1x4x256xf32> to vector<4x256xf32>
    %78 = arith.addf %9, %77 : vector<4x256xf32>
    %c17_i32_39 = arith.constant 17 : i32
    %79 = tpu.dynamic_rotate %77 by %c17_i32_39 dim 1 : vector<4x256xf32>, i32 -> vector<4x256xf32>
    %80 = vector.broadcast %5 : vector<1x256xf32> to vector<4x256xf32>
    %81 = arith.mulf %79, %80 : vector<4x256xf32>
    %c0_40 = arith.constant 0 : index
    %c0_41 = arith.constant 0 : index
    %c0_42 = arith.constant 0 : index
    %82 = vector.load %arg2[%c0_40, %c0_41, %c0_42] : memref<9x4x4xf32, #tpu.memory_space<vmem>>, vector<1x4x4xf32>
    %83 = vector.shape_cast %82 : vector<1x4x4xf32> to vector<4x4xf32>
    %cst_43 = arith.constant dense<0.000000e+00> : vector<4x256xf32>
    %84 = tpu.matmul %83, %81, %cst_43 {dimension_numbers = #tpu.dot_dimension_numbers<[1], [0], [0], [1], [0, 0, 1, 1], [], []>} : vector<4x4xf32>, vector<4x256xf32>, vector<4x256xf32> -> vector<4x256xf32>
    %85 = arith.addf %78, %84 : vector<4x256xf32>
    %c16_i32_44 = arith.constant 16 : i32
    %86 = tpu.dynamic_rotate %77 by %c16_i32_44 dim 1 : vector<4x256xf32>, i32 -> vector<4x256xf32>
    %87 = vector.broadcast %1 : vector<1x256xf32> to vector<4x256xf32>
    %88 = arith.mulf %86, %87 : vector<4x256xf32>
    %c1_45 = arith.constant 1 : index
    %c0_46 = arith.constant 0 : index
    %c0_47 = arith.constant 0 : index
    %89 = vector.load %arg2[%c1_45, %c0_46, %c0_47] : memref<9x4x4xf32, #tpu.memory_space<vmem>>, vector<1x4x4xf32>
    %90 = vector.shape_cast %89 : vector<1x4x4xf32> to vector<4x4xf32>
    %cst_48 = arith.constant dense<0.000000e+00> : vector<4x256xf32>
    %91 = tpu.matmul %90, %88, %cst_48 {dimension_numbers = #tpu.dot_dimension_numbers<[1], [0], [0], [1], [0, 0, 1, 1], [], []>} : vector<4x4xf32>, vector<4x256xf32>, vector<4x256xf32> -> vector<4x256xf32>
    %92 = arith.addf %85, %91 : vector<4x256xf32>
    %c15_i32_49 = arith.constant 15 : i32
    %93 = tpu.dynamic_rotate %77 by %c15_i32_49 dim 1 : vector<4x256xf32>, i32 -> vector<4x256xf32>
    %94 = vector.broadcast %6 : vector<1x256xf32> to vector<4x256xf32>
    %95 = arith.mulf %93, %94 : vector<4x256xf32>
    %c2_50 = arith.constant 2 : index
    %c0_51 = arith.constant 0 : index
    %c0_52 = arith.constant 0 : index
    %96 = vector.load %arg2[%c2_50, %c0_51, %c0_52] : memref<9x4x4xf32, #tpu.memory_space<vmem>>, vector<1x4x4xf32>
    %97 = vector.shape_cast %96 : vector<1x4x4xf32> to vector<4x4xf32>
    %cst_53 = arith.constant dense<0.000000e+00> : vector<4x256xf32>
    %98 = tpu.matmul %97, %95, %cst_53 {dimension_numbers = #tpu.dot_dimension_numbers<[1], [0], [0], [1], [0, 0, 1, 1], [], []>} : vector<4x4xf32>, vector<4x256xf32>, vector<4x256xf32> -> vector<4x256xf32>
    %99 = arith.addf %92, %98 : vector<4x256xf32>
    %c1_i32_54 = arith.constant 1 : i32
    %100 = tpu.dynamic_rotate %77 by %c1_i32_54 dim 1 : vector<4x256xf32>, i32 -> vector<4x256xf32>
    %101 = vector.broadcast %3 : vector<1x256xf32> to vector<4x256xf32>
    %102 = arith.mulf %100, %101 : vector<4x256xf32>
    %c3_55 = arith.constant 3 : index
    %c0_56 = arith.constant 0 : index
    %c0_57 = arith.constant 0 : index
    %103 = vector.load %arg2[%c3_55, %c0_56, %c0_57] : memref<9x4x4xf32, #tpu.memory_space<vmem>>, vector<1x4x4xf32>
    %104 = vector.shape_cast %103 : vector<1x4x4xf32> to vector<4x4xf32>
    %cst_58 = arith.constant dense<0.000000e+00> : vector<4x256xf32>
    %105 = tpu.matmul %104, %102, %cst_58 {dimension_numbers = #tpu.dot_dimension_numbers<[1], [0], [0], [1], [0, 0, 1, 1], [], []>} : vector<4x4xf32>, vector<4x256xf32>, vector<4x256xf32> -> vector<4x256xf32>
    %106 = arith.addf %99, %105 : vector<4x256xf32>
    %c4_59 = arith.constant 4 : index
    %c0_60 = arith.constant 0 : index
    %c0_61 = arith.constant 0 : index
    %107 = vector.load %arg2[%c4_59, %c0_60, %c0_61] : memref<9x4x4xf32, #tpu.memory_space<vmem>>, vector<1x4x4xf32>
    %108 = vector.shape_cast %107 : vector<1x4x4xf32> to vector<4x4xf32>
    %cst_62 = arith.constant dense<0.000000e+00> : vector<4x256xf32>
    %109 = tpu.matmul %108, %77, %cst_62 {dimension_numbers = #tpu.dot_dimension_numbers<[1], [0], [0], [1], [0, 0, 1, 1], [], []>} : vector<4x4xf32>, vector<4x256xf32>, vector<4x256xf32> -> vector<4x256xf32>
    %110 = arith.addf %106, %109 : vector<4x256xf32>
    %c255_i32_63 = arith.constant 255 : i32
    %111 = tpu.dynamic_rotate %77 by %c255_i32_63 dim 1 : vector<4x256xf32>, i32 -> vector<4x256xf32>
    %112 = vector.broadcast %4 : vector<1x256xf32> to vector<4x256xf32>
    %113 = arith.mulf %111, %112 : vector<4x256xf32>
    %c5_64 = arith.constant 5 : index
    %c0_65 = arith.constant 0 : index
    %c0_66 = arith.constant 0 : index
    %114 = vector.load %arg2[%c5_64, %c0_65, %c0_66] : memref<9x4x4xf32, #tpu.memory_space<vmem>>, vector<1x4x4xf32>
    %115 = vector.shape_cast %114 : vector<1x4x4xf32> to vector<4x4xf32>
    %cst_67 = arith.constant dense<0.000000e+00> : vector<4x256xf32>
    %116 = tpu.matmul %115, %113, %cst_67 {dimension_numbers = #tpu.dot_dimension_numbers<[1], [0], [0], [1], [0, 0, 1, 1], [], []>} : vector<4x4xf32>, vector<4x256xf32>, vector<4x256xf32> -> vector<4x256xf32>
    %117 = arith.addf %110, %116 : vector<4x256xf32>
    %c241_i32_68 = arith.constant 241 : i32
    %118 = tpu.dynamic_rotate %77 by %c241_i32_68 dim 1 : vector<4x256xf32>, i32 -> vector<4x256xf32>
    %119 = vector.broadcast %7 : vector<1x256xf32> to vector<4x256xf32>
    %120 = arith.mulf %118, %119 : vector<4x256xf32>
    %c6_69 = arith.constant 6 : index
    %c0_70 = arith.constant 0 : index
    %c0_71 = arith.constant 0 : index
    %121 = vector.load %arg2[%c6_69, %c0_70, %c0_71] : memref<9x4x4xf32, #tpu.memory_space<vmem>>, vector<1x4x4xf32>
    %122 = vector.shape_cast %121 : vector<1x4x4xf32> to vector<4x4xf32>
    %cst_72 = arith.constant dense<0.000000e+00> : vector<4x256xf32>
    %123 = tpu.matmul %122, %120, %cst_72 {dimension_numbers = #tpu.dot_dimension_numbers<[1], [0], [0], [1], [0, 0, 1, 1], [], []>} : vector<4x4xf32>, vector<4x256xf32>, vector<4x256xf32> -> vector<4x256xf32>
    %124 = arith.addf %117, %123 : vector<4x256xf32>
    %c240_i32_73 = arith.constant 240 : i32
    %125 = tpu.dynamic_rotate %77 by %c240_i32_73 dim 1 : vector<4x256xf32>, i32 -> vector<4x256xf32>
    %126 = vector.broadcast %2 : vector<1x256xf32> to vector<4x256xf32>
    %127 = arith.mulf %125, %126 : vector<4x256xf32>
    %c7_74 = arith.constant 7 : index
    %c0_75 = arith.constant 0 : index
    %c0_76 = arith.constant 0 : index
    %128 = vector.load %arg2[%c7_74, %c0_75, %c0_76] : memref<9x4x4xf32, #tpu.memory_space<vmem>>, vector<1x4x4xf32>
    %129 = vector.shape_cast %128 : vector<1x4x4xf32> to vector<4x4xf32>
    %cst_77 = arith.constant dense<0.000000e+00> : vector<4x256xf32>
    %130 = tpu.matmul %129, %127, %cst_77 {dimension_numbers = #tpu.dot_dimension_numbers<[1], [0], [0], [1], [0, 0, 1, 1], [], []>} : vector<4x4xf32>, vector<4x256xf32>, vector<4x256xf32> -> vector<4x256xf32>
    %131 = arith.addf %124, %130 : vector<4x256xf32>
    %c239_i32_78 = arith.constant 239 : i32
    %132 = tpu.dynamic_rotate %77 by %c239_i32_78 dim 1 : vector<4x256xf32>, i32 -> vector<4x256xf32>
    %133 = vector.broadcast %8 : vector<1x256xf32> to vector<4x256xf32>
    %134 = arith.mulf %132, %133 : vector<4x256xf32>
    %c8_79 = arith.constant 8 : index
    %c0_80 = arith.constant 0 : index
    %c0_81 = arith.constant 0 : index
    %135 = vector.load %arg2[%c8_79, %c0_80, %c0_81] : memref<9x4x4xf32, #tpu.memory_space<vmem>>, vector<1x4x4xf32>
    %136 = vector.shape_cast %135 : vector<1x4x4xf32> to vector<4x4xf32>
    %cst_82 = arith.constant dense<0.000000e+00> : vector<4x256xf32>
    %137 = tpu.matmul %136, %134, %cst_82 {dimension_numbers = #tpu.dot_dimension_numbers<[1], [0], [0], [1], [0, 0, 1, 1], [], []>} : vector<4x4xf32>, vector<4x256xf32>, vector<4x256xf32> -> vector<4x256xf32>
    %138 = arith.addf %131, %137 : vector<4x256xf32>
    %c1_83 = arith.constant 1 : index
    %c0_84 = arith.constant 0 : index
    %c0_85 = arith.constant 0 : index
    %139 = vector.load %arg5[%c1_83, %c0_84, %c0_85] : memref<2x4x256xf32, #tpu.memory_space<vmem>>, vector<1x4x256xf32>
    %140 = vector.shape_cast %139 : vector<1x4x256xf32> to vector<4x256xf32>
    %141 = vector.shape_cast %138 : vector<4x256xf32> to vector<1x4x256xf32>
    tpu.vector_store %arg5[%c1_83, %c0_84, %c0_85], %141 {strides = array<i32>} : memref<2x4x256xf32, #tpu.memory_space<vmem>>, vector<1x4x256xf32>,
    return
  }
  func.func @transform_0(%arg0: i32) -> (i32, i32, i32) {
    %c0_i32 = arith.constant 0 : i32
    %c0_i32_0 = arith.constant 0 : i32
    %c0_i32_1 = arith.constant 0 : i32
    %c0_i32_2 = arith.constant 0 : i32
    return %c0_i32, %c0_i32_0, %c0_i32_1 : i32, i32, i32
  }
  func.func @transform_1(%arg0: i32) -> (i32, i32, i32) {
    %c0_i32 = arith.constant 0 : i32
    %c0_i32_0 = arith.constant 0 : i32
    %c0_i32_1 = arith.constant 0 : i32
    %c0_i32_2 = arith.constant 0 : i32
    return %c0_i32, %c0_i32_0, %c0_i32_1 : i32, i32, i32
  }
  func.func @transform_2(%arg0: i32) -> (i32, i32) {
    %c0_i32 = arith.constant 0 : i32
    %c0_i32_0 = arith.constant 0 : i32
    %c0_i32_1 = arith.constant 0 : i32
    return %c0_i32, %c0_i32_0 : i32, i32
  }
  func.func @transform_3(%arg0: i32) -> (i32, i32) {
    %c0_i32 = arith.constant 0 : i32
    %c0_i32_0 = arith.constant 0 : i32
    %c0_i32_1 = arith.constant 0 : i32
    return %c0_i32, %c0_i32_0 : i32, i32
  }
  func.func @transform_4(%arg0: i32) -> (i32, i32, i32) {
    %c0_i32 = arith.constant 0 : i32
    %c0_i32_0 = arith.constant 0 : i32
    %c0_i32_1 = arith.constant 0 : i32
    %c0_i32_2 = arith.constant 0 : i32
    return %c0_i32, %c0_i32_0, %c0_i32_1 : i32, i32, i32
  }
}

</mosaic_0001>

<bundles_post_ra>
// kernel: residual_cube_forward.1
= control target key start
LH: loop header
LB: loop body
LE: loop exit
PB: predicated region body
PF: predicated region fallthrough
CT: control target
= control target key end

     0   :  { %v1975_v1 = vmov 0.0   ;;  %s1976_s17 = smov 16   ;;  %s1977_s18 = smov 17   ;;  %v41_v5 = vlaneseq  ;;  %vm72_vm2 = vcmask 1043456   ;;  %vm68_vm4 = vcmask 31744   ;;  %s2389_s0 = inlined_call_operand.vmem [shape: f32[2,4,256], index: 0, kind: input, shape index: {}]   ;;  %s2390_s3 = inlined_call_operand.vmem [shape: f32[4,256], index: 3, kind: input, shape index: {}]   ;;  %s2391_s1 = inlined_call_operand.vmem [shape: f32[9,4,4], index: 1, kind: input, shape index: {}]   ;;  %s2392_s2 = inlined_call_operand.vmem [shape: f32[4,256], index: 2, kind: input, shape index: {}]   ;;  %s2393_s4 = inlined_call_operand.vmem [shape: f32[2,4,256], index: 4, kind: output, shape index: {}]  }
   0x1   :  { %v2012_v0 = vld [vmem:[%s2389_s0] sm:$0xff]  ;;  %143 = vmatprep.mubr.f32.mxu0 %v1975_v1  ;;  %257 = vmatprep.mubr.f32.mxu1 %v1975_v1  ;;  %s1978_s19 = smov 15   ;;  %s1979_s20 = smov 1   ;;  %v2037_v3 = vld [vmem:[%s2389_s0 + $0x8] sm:$0xff] }
   0x2   :  { %155 = vrot.lane.b32.xlu1 %v2012_v0, %s1976_s17  ;;  %37 = vrot.lane.b32.xlu0 %v2012_v0, %s1977_s18  ;;  %v2020_v2 = vcombine.high %v2012_v0, %v2012_v0  ;;  %s1980_s21 = smov 127   ;;  %s1981_s22 = smov 113   ;;  %v2043_v4 = vcombine.high %v2037_v3, %v2037_v3  ;;  %v2064_v6 = vld [vmem:[%s2390_s3] sm:$0xff]  ;;  %v2066_v7 = vshrl.u32 %v41_v5, 7  ;;  %v2076_v14 = vand.u32 127, %v41_v5 }
   0x3   :  { %s1982_s23 = smov 112   ;;  %s1983_s26 = smov 111   ;;  %v1889_v8 = vrot.slane %v2064_v6, 10  ;;  %v1890_v9 = vrot.slane %v2064_v6, 11  ;;  %v1891_v31 = vrot.slane %v2064_v6, 9 }
   0x4   :  { %v49_v10 = vsub.s32 0, %v2066_v7  ;;  %v53_v12 = vsub.s32 4, %v2066_v7  ;;  %v393_v19 = vsub.s32 2, %v2066_v7  ;;  %v397_v20 = vsub.s32 6, %v2066_v7  ;;  %v67_v46 = vld [vmem:[%s2391_s1] sm:$0xf] }
   0x5   :  { %v2072_v11 = vmul.f32 %v1889_v8, %v2064_v6  ;;  %v26_v13 = vmul.f32 %v1890_v9, %v2064_v6  ;;  %vm159_vm0 = vcmp.lt.s32.totalorder %v2076_v14, 16  ;;  %vm43_vm1 = vcmp.lt.s32.totalorder %v2076_v14, 17  ;;  %v1895_v47 = vld [vmem:[%s2391_s1 + $0x4] sm:$0xf]  ;;  %v1899_v61 = vld [vmem:[%s2391_s1 + $0x8] sm:$0xf] }
   0x6   :  { %157 = vrot.lane.b32.xlu1 %v2020_v2, %s1976_s17  ;;  %39 = vrot.lane.b32.xlu0 %v2020_v2, %s1977_s18  ;;  %v165_v15 = vrot.slane %v2064_v6, %v49_v10  ;;  %v169_v17 = vrot.slane %v2064_v6, %v53_v12  ;;  %vm273_vm3 = vcmp.lt.s32.totalorder %v2076_v14, 15  ;;  %v394_v29 = vrot.slane %v2064_v6, %v393_v19 }
   0x7   :  { %v50_v16 = vrot.slane %v2072_v11, %v49_v10  ;;  %v54_v18 = vrot.slane %v2072_v11, %v53_v12  ;;  %v280_v23 = vrot.slane %v26_v13, %v49_v10  ;;  %v284_v24 = vrot.slane %v26_v13, %v53_v12 }
   0x8   :  { %v2086_v25 = vrot.slane %v165_v15, %v49_v10  ;;  %v2090_v27 = vrot.slane %v169_v17, %v49_v10  ;;  %v398_v30 = vrot.slane %v2064_v6, %v397_v20  ;;  %v592_v36 = vsub.s32 3, %v2066_v7  ;;  %v1907_v17 = vld [vmem:[%s2391_s1 + $0x10] sm:$0xf] }
   0x9   :  { %v2088_v26 = vrot.slane %v50_v16, %v49_v10  ;;  %v2092_v28 = vrot.slane %v54_v18, %v49_v10  ;;  %v2098_v34 = vrot.slane %v280_v23, %v49_v10  ;;  %v2100_v35 = vrot.slane %v284_v24, %v49_v10  ;;  %v1903_v16 = vld [vmem:[%s2391_s1 + $0xc] sm:$0xf] }
   0xa   :  { %271 = vrot.lane.b32.xlu1 %v2020_v2, %s1978_s19  ;;  %269 = vrot.lane.b32.xlu0 %v2012_v0, %s1978_s19  ;;  %v596_v37 = vsub.s32 7, %v2066_v7  ;;  %v2124_v50 = vrot.slane %v394_v29, %v393_v19  ;;  %v2126_v51 = vrot.slane %v398_v30, %v393_v19  ;;  %v30_v52 = vmul.f32 %v1891_v31, %v2064_v6  ;;  %v1911_v31 = vld [vmem:[%s2391_s1 + $0x14] sm:$0xf] }
   0xb   :  { %v2130_v53 = vsub.s32 1, %v2066_v7  ;;  %v593_v56 = vrot.slane %v2064_v6, %v592_v36  ;;  %v2140_v57 = vsub.s32 5, %v2066_v7  ;;  %vm388_vm5 = vcmp.lt.s32.totalorder %v2076_v14, 1 }
   0xc   :  { %v597_v60 = vrot.slane %v2064_v6, %v596_v37  ;;  %vm587_vm6 = vcmp.lt.s32.totalorder %v2076_v14, 127  ;;  %vm701_vm7 = vcmp.lt.s32.totalorder %v2076_v14, 113  ;;  %vm816_vm8 = vcmp.lt.s32.totalorder %v2076_v14, 112 }
   0xd   :  { %v708_v5 = vrot.slane %v30_v52, %v2130_v53  ;;  %v2160_v9 = vrot.slane %v593_v56, %v592_v36  ;;  %v712_v10 = vrot.slane %v30_v52, %v2140_v57  ;;  %v826_v23 = vrot.slane %v2064_v6, %v2140_v57 }
   0xe   :  { %386 = vrot.lane.b32.xlu1 %v2020_v2, %s1979_s20  ;;  %384 = vrot.lane.b32.xlu0 %v2012_v0, %s1979_s20  ;;  %v2166_v15 = vrot.slane %v597_v60, %v592_v36  ;;  %vm930_vm9 = vcmp.lt.s32.totalorder %v2076_v14, 111  ;;  %v1923_v60 = vld [vmem:[%s2391_s1 + $0x20] sm:$0xf] }
   0xf   :  { %v2197_v30 = vrot.slane %v712_v10, %v2130_v53  ;;  %v1055_v10 = vld [vmem:[%s2391_s1] sm:$0xf] }
  0x10   :  { %v31_v14 = vld [vmem:[%s2392_s2] sm:$0xff] }
  0x12   :  { %585 = vrot.lane.b32.xlu1 %v2020_v2, %s1980_s21  ;;  %583 = vrot.lane.b32.xlu0 %v2012_v0, %s1980_s21 }
  0x16   :  { %699 = vrot.lane.b32.xlu1 %v2020_v2, %s1981_s22  ;;  %697 = vrot.lane.b32.xlu0 %v2012_v0, %s1981_s22 }
  0x1a   :  { %814 = vrot.lane.b32.xlu1 %v2020_v2, %s1982_s23  ;;  %812 = vrot.lane.b32.xlu0 %v2012_v0, %s1982_s23 }
  0x1e   :  { %928 = vrot.lane.b32.xlu1 %v2020_v2, %s1983_s26  ;;  %926 = vrot.lane.b32.xlu0 %v2012_v0, %s1983_s26 }
  0x22   :  { %1049 = vrot.lane.b32.xlu1 %v2043_v4, %s1977_s18  ;;  %1047 = vrot.lane.b32.xlu0 %v2037_v3, %s1977_s18 }
  0x26   :  { %1143 = vrot.lane.b32.xlu1 %v2043_v4, %s1976_s17  ;;  %1141 = vrot.lane.b32.xlu0 %v2037_v3, %s1976_s17 }
  0x2a   :  { %1237 = vrot.lane.b32.xlu1 %v2043_v4, %s1978_s19  ;;  %1235 = vrot.lane.b32.xlu0 %v2037_v3, %s1978_s19 }
  0x2e   :  { %1331 = vrot.lane.b32.xlu1 %v2043_v4, %s1979_s20  ;;  %1329 = vrot.lane.b32.xlu0 %v2037_v3, %s1979_s20 }
  0x32   :  { %1509 = vrot.lane.b32.xlu1 %v2043_v4, %s1980_s21  ;;  %1507 = vrot.lane.b32.xlu0 %v2037_v3, %s1980_s21 }
  0x36   :  { %1603 = vrot.lane.b32.xlu1 %v2043_v4, %s1981_s22  ;;  %1601 = vrot.lane.b32.xlu0 %v2037_v3, %s1981_s22 }
  0x3a   :  { %1697 = vrot.lane.b32.xlu1 %v2043_v4, %s1982_s23  ;;  %1695 = vrot.lane.b32.xlu0 %v2037_v3, %s1982_s23 }
  0x3e   :  { %1791 = vrot.lane.b32.xlu1 %v2043_v4, %s1983_s26  ;;  %1789 = vrot.lane.b32.xlu0 %v2037_v3, %s1983_s26 }
  0x74   :  { %v156_v21 = vpop.permute.xlu1 %155  ;;  %v38_v22 = vpop.permute.xlu0 %37 }
  0x78   :  { %v158_v32 = vpop.permute.xlu1 %157  ;;  %v40_v33 = vpop.permute.xlu0 %39 }
  0x79   :  { %v160_v38 = vsel %vm159_vm0, %v156_v21, %v158_v32  ;;  %v161_v39 = vsel %vm159_vm0, %v158_v32, %v156_v21  ;;  %v44_v40 = vsel %vm43_vm1, %v38_v22, %v40_v33  ;;  %v45_v41 = vsel %vm43_vm1, %v40_v33, %v38_v22 }
  0x7a   :  { %v180_v42 = vmul.f32 %v2086_v25, %v161_v39  ;;  %v65_v43 = vmul.f32 %v2088_v26, %v45_v41  ;;  %v181_v44 = vmul.f32 %v2090_v27, %v160_v38  ;;  %v66_v45 = vmul.f32 %v2092_v28, %v44_v40 }
  0x7b   :  { %v2189_v22 = vrot.slane %v708_v5, %v2130_v53  ;;  %v936_v38 = vrot.slane %v2072_v11, %v2130_v53  ;;  %v2221_v41 = vrot.slane %v826_v23, %v2130_v53  ;;  %v1935_v23 = vld [vmem:[%s2391_s1 + $0x8] sm:$0xf] }
  0x7c   :  { %1896 = vmatprep.subr.msk.mxu1 %vm72_vm2, %v181_v44  ;;  %v272_v48 = vpop.permute.xlu1 %271  ;;  %1892 = vmatprep.subr.msk.mxu0 %vm72_vm2, %v66_v45  ;;  %v270_v49 = vpop.permute.xlu0 %269 }
  0x7d   :  { %v274_v54 = vsel %vm273_vm3, %v270_v49, %v272_v48  ;;  %v275_v55 = vsel %vm273_vm3, %v272_v48, %v270_v49  ;;  %1893 = vmatpush1.msk.msra.mxu0 %vm72_vm2, %v65_v43  ;;  %1897 = vmatpush1.msk.msra.mxu1 %vm72_vm2, %v180_v42  ;;  %v940_v42 = vrot.slane %v2072_v11, %v2140_v57  ;;  %v1915_v43 = vld [vmem:[%s2391_s1 + $0x18] sm:$0xf] }
  0x7e   :  { %v295_v58 = vmul.f32 %v2098_v34, %v275_v55  ;;  %v296_v59 = vmul.f32 %v2100_v35, %v274_v54  ;;  %1894 = vmatmul.mubr.msk.f32.vlgmr.msra.gmra.mrb[0].mxu0 %vm68_vm4, %v67_v46  ;;  %1898 = vmatmul.mubr.msk.f32.vlgmr.msra.gmra.mrb[0].mxu1 %vm68_vm4, %v1895_v47  ;;  %v2240_v49 = vrot.slane %v936_v38, %v2130_v53  ;;  %v1919_v54 = vld [vmem:[%s2391_s1 + $0x1c] sm:$0xf] }
  0x7f   :  { %486 = vmatprep.mubr.f32.mxu1 %v1975_v1  ;;  %372 = vmatprep.mubr.f32.mxu0 %v1975_v1  ;;  %v2243_v52 = vrot.slane %v940_v42, %v2130_v53 }
  0x80   :  { %v387_v62 = vpop.permute.xlu1 %386  ;;  %1900 = vmatprep.subr.msk.mxu0 %vm72_vm2, %v296_v59  ;;  %v385_v63 = vpop.permute.xlu0 %384 }
  0x81   :  { %v389_v7 = vsel %vm388_vm5, %v385_v63, %v387_v62  ;;  %v390_v8 = vsel %vm388_vm5, %v387_v62, %v385_v63  ;;  %1901 = vmatpush1.msk.msra.mxu0 %vm72_vm2, %v295_v58 }
  0x82   :  { %v409_v12 = vmul.f32 %v2124_v50, %v390_v8  ;;  %v410_v13 = vmul.f32 %v2126_v51, %v389_v7  ;;  %1902 = vmatmul.mubr.msk.f32.vlgmr.msra.gmra.mrb[2].mxu0 %vm68_vm4, %v1899_v61  ;;  %1908 = vmatprep.subr.msk.mxu0 %vm72_vm2, %v2020_v2  ;;  %v822_v2 = vrot.slane %v2064_v6, %v2130_v53 }
  0x83   :  { %1909 = vmatpush1.msk.msra.mxu0 %vm72_vm2, %v2012_v0  ;;  %571 = vmatprep.mubr.f32.mxu0 %v1975_v1 }
  0x84   :  { %v586_v18 = vpop.permute.xlu1 %585  ;;  %1904 = vmatprep.subr.msk.mxu1 %vm72_vm2, %v410_v13  ;;  %v584_v19 = vpop.permute.xlu0 %583  ;;  %v2214_v37 = vrot.slane %v822_v2, %v2130_v53 }
  0x85   :  { %v588_v20 = vsel %vm587_vm6, %v584_v19, %v586_v18  ;;  %v589_v21 = vsel %vm587_vm6, %v586_v18, %v584_v19  ;;  %1905 = vmatpush1.msk.msra.mxu1 %vm72_vm2, %v409_v12  ;;  %v1931_v18 = vld [vmem:[%s2391_s1 + $0x4] sm:$0xf] }
  0x86   :  { %v608_v24 = vmul.f32 %v2160_v9, %v588_v20  ;;  %v609_v29 = vmul.f32 %v2166_v15, %v589_v21  ;;  %1906 = vmatmul.mubr.msk.f32.vlgmr.msra.gmra.mrb[2].mxu1 %vm68_vm4, %v1903_v16  ;;  %1910 = vmatmul.mubr.msk.f32.vlgmr.msra.gmra.mrb[4].mxu0 %vm68_vm4, %v1907_v17 }
  0x87   :  { %685 = vmatprep.mubr.f32.mxu1 %v1975_v1  ;;  %800 = vmatprep.mubr.f32.mxu0 %v1975_v1 }
  0x88   :  { %v700_v6 = vpop.permute.xlu1 %699  ;;  %1912 = vmatprep.subr.msk.mxu1 %vm72_vm2, %v609_v29  ;;  %v698_v32 = vpop.permute.xlu0 %697 }
  0x89   :  { %v702_v33 = vsel %vm701_vm7, %v698_v32, %v700_v6  ;;  %v703_v36 = vsel %vm701_vm7, %v700_v6, %v698_v32  ;;  %1913 = vmatpush1.msk.msra.mxu1 %vm72_vm2, %v608_v24  ;;  %v1939_v32 = vld [vmem:[%s2391_s1 + $0xc] sm:$0xf] }
  0x8a   :  { %v723_v39 = vmul.f32 %v2189_v22, %v702_v33  ;;  %v724_v40 = vmul.f32 %v2197_v30, %v703_v36  ;;  %1914 = vmatmul.mubr.msk.f32.vlgmr.msra.gmra.mrb[4].mxu1 %vm68_vm4, %v1911_v31 }
  0x8b   :  { %914 = vmatprep.mubr.f32.mxu1 %v1975_v1 }
  0x8c   :  { %v815_v44 = vpop.permute.xlu1 %814  ;;  %1916 = vmatprep.subr.msk.mxu0 %vm72_vm2, %v724_v40  ;;  %v813_v45 = vpop.permute.xlu0 %812  ;;  %v1947_v40 = vld [vmem:[%s2391_s1 + $0x14] sm:$0xf] }
  0x8d   :  { %v817_v46 = vsel %vm816_vm8, %v813_v45, %v815_v44  ;;  %v818_v47 = vsel %vm816_vm8, %v815_v44, %v813_v45  ;;  %1917 = vmatpush1.msk.msra.mxu0 %vm72_vm2, %v723_v39 }
  0x8e   :  { %v837_v11 = vmul.f32 %v2214_v37, %v817_v46  ;;  %v838_v48 = vmul.f32 %v2221_v41, %v818_v47  ;;  %1918 = vmatmul.mubr.msk.f32.vlgmr.msra.gmra.mrb[6].mxu0 %vm68_vm4, %v1915_v43  ;;  %v1951_v46 = vld [vmem:[%s2391_s1 + $0x18] sm:$0xf] }
  0x8f   :  { %1028 = vmatprep.mubr.f32.mxu0 %v1975_v1 }
  0x90   :  { %v929_v55 = vpop.permute.xlu1 %928  ;;  %1920 = vmatprep.subr.msk.mxu1 %vm72_vm2, %v838_v48  ;;  %v927_v56 = vpop.permute.xlu0 %926 }
  0x91   :  { %v931_v57 = vsel %vm930_vm9, %v927_v56, %v929_v55  ;;  %v932_v58 = vsel %vm930_vm9, %v929_v55, %v927_v56  ;;  %1921 = vmatpush1.msk.msra.mxu1 %vm72_vm2, %v837_v11  ;;  %v1955_v55 = vld [vmem:[%s2391_s1 + $0x1c] sm:$0xf] }
  0x92   :  { %v951_v53 = vmul.f32 %v2240_v49, %v931_v57  ;;  %v952_v59 = vmul.f32 %v2243_v52, %v932_v58  ;;  %1922 = vmatmul.mubr.msk.f32.vlgmr.msra.gmra.mrb[6].mxu1 %vm68_vm4, %v1919_v54 }
  0x93   :  { %1129 = vmatprep.mubr.f32.mxu1 %v1975_v1 }
  0x94   :  { %v1050_v61 = vpop.permute.xlu1 %1049  ;;  %1924 = vmatprep.subr.msk.mxu0 %vm72_vm2, %v952_v59  ;;  %v1048_v62 = vpop.permute.xlu0 %1047 }
  0x95   :  { %v1051_v63 = vsel %vm43_vm1, %v1048_v62, %v1050_v61  ;;  %v1052_v5 = vsel %vm43_vm1, %v1050_v61, %v1048_v62  ;;  %1925 = vmatpush1.msk.msra.mxu0 %vm72_vm2, %v951_v53 }
  0x96   :  { %v1053_v7 = vmul.f32 %v1052_v5, %v2088_v26  ;;  %v1054_v8 = vmul.f32 %v1051_v63, %v2092_v28  ;;  %1926 = vmatmul.mubr.msk.f32.vlgmr.msra.gmra.mrb[8].mxu0 %vm68_vm4, %v1923_v60 }
  0x97   :  { %1223 = vmatprep.mubr.f32.mxu0 %v1975_v1 }
  0x98   :  { %v1144_v12 = vpop.permute.xlu1 %1143  ;;  %1928 = vmatprep.subr.msk.mxu1 %vm72_vm2, %v1054_v8  ;;  %v1142_v13 = vpop.permute.xlu0 %1141 }
  0x99   :  { %v1145_v16 = vsel %vm159_vm0, %v1142_v13, %v1144_v12  ;;  %v1146_v26 = vsel %vm159_vm0, %v1144_v12, %v1142_v13  ;;  %1929 = vmatpush1.msk.msra.mxu1 %vm72_vm2, %v1053_v7 }
  0x9a   :  { %v1147_v28 = vmul.f32 %v1146_v26, %v2086_v25  ;;  %v1148_v17 = vmul.f32 %v1145_v16, %v2090_v27  ;;  %1930 = vmatmul.mubr.msk.f32.vlgmr.msra.gmra.mrb[8].mxu1 %vm68_vm4, %v1055_v10 }
  0x9b   :  { %1317 = vmatprep.mubr.f32.mxu1 %v1975_v1 }
  0x9c   :  { %v1238_v19 = vpop.permute.xlu1 %1237  ;;  %1932 = vmatprep.subr.msk.mxu0 %vm72_vm2, %v1148_v17  ;;  %v1236_v2 = vpop.permute.xlu0 %1235 }
  0x9d   :  { %v1239_v20 = vsel %vm273_vm3, %v1236_v2, %v1238_v19  ;;  %v1240_v25 = vsel %vm273_vm3, %v1238_v19, %v1236_v2  ;;  %1933 = vmatpush1.msk.msra.mxu0 %vm72_vm2, %v1147_v28 }
  0x9e   :  { %v1241_v27 = vmul.f32 %v1240_v25, %v2098_v34  ;;  %v1242_v21 = vmul.f32 %v1239_v20, %v2100_v35  ;;  %1934 = vmatmul.mubr.msk.f32.vlgmr.msra.gmra.mrb[10].mxu0 %vm68_vm4, %v1931_v18 }
  0x9f   :  { %1411 = vmatprep.mubr.f32.mxu0 %v1975_v1 }
  0xa0   :  { %v1332_v24 = vpop.permute.xlu1 %1331  ;;  %1936 = vmatprep.subr.msk.mxu1 %vm72_vm2, %v1242_v21  ;;  %v1330_v29 = vpop.permute.xlu0 %1329 }
  0xa1   :  { %v1333_v31 = vsel %vm388_vm5, %v1330_v29, %v1332_v24  ;;  %v1334_v34 = vsel %vm388_vm5, %v1332_v24, %v1330_v29  ;;  %1937 = vmatpush1.msk.msra.mxu1 %vm72_vm2, %v1241_v27 }
  0xa2   :  { %v1335_v35 = vmul.f32 %v1334_v34, %v2124_v50  ;;  %v1336_v6 = vmul.f32 %v1333_v31, %v2126_v51  ;;  %1938 = vmatmul.mubr.msk.f32.vlgmr.msra.gmra.mrb[10].mxu1 %vm68_vm4, %v1935_v23  ;;  %1944 = vmatprep.subr.msk.mxu1 %vm72_vm2, %v2043_v4  ;;  %v1943_v50 = vld [vmem:[%s2391_s1 + $0x10] sm:$0xf] }
  0xa3   :  { %1945 = vmatpush1.msk.msra.mxu1 %vm72_vm2, %v2037_v3  ;;  %1495 = vmatprep.mubr.f32.mxu1 %v1975_v1 }
  0xa4   :  { %v1510_v33 = vpop.permute.xlu1 %1509  ;;  %1940 = vmatprep.subr.msk.mxu0 %vm72_vm2, %v1336_v6  ;;  %v1508_v51 = vpop.permute.xlu0 %1507 }
  0xa5   :  { %v1511_v4 = vsel %vm587_vm6, %v1508_v51, %v1510_v33  ;;  %v1512_v36 = vsel %vm587_vm6, %v1510_v33, %v1508_v51  ;;  %1941 = vmatpush1.msk.msra.mxu0 %vm72_vm2, %v1335_v35 }
  0xa6   :  { %v1513_v38 = vmul.f32 %v1511_v4, %v2160_v9  ;;  %v1514_v39 = vmul.f32 %v1512_v36, %v2166_v15  ;;  %1942 = vmatmul.mubr.msk.f32.vlgmr.msra.gmra.mrb[12].mxu0 %vm68_vm4, %v1939_v32  ;;  %1946 = vmatmul.mubr.msk.f32.vlgmr.msra.gmra.mrb[12].mxu1 %vm68_vm4, %v1943_v50 }
  0xa7   :  { %1589 = vmatprep.mubr.f32.mxu0 %v1975_v1  ;;  %1683 = vmatprep.mubr.f32.mxu1 %v1975_v1 }
  0xa8   :  { %v1604_v42 = vpop.permute.xlu1 %1603  ;;  %1948 = vmatprep.subr.msk.mxu0 %vm72_vm2, %v1514_v39  ;;  %v1602_v43 = vpop.permute.xlu0 %1601 }
  0xa9   :  { %v1605_v9 = vsel %vm701_vm7, %v1602_v43, %v1604_v42  ;;  %v1606_v15 = vsel %vm701_vm7, %v1604_v42, %v1602_v43  ;;  %1949 = vmatpush1.msk.msra.mxu0 %vm72_vm2, %v1513_v38  ;;  %v1043_v38 = vadd.f32 %v2037_v3, %v31_v14 }
  0xaa   :  { %v1607_v44 = vmul.f32 %v1605_v9, %v2189_v22  ;;  %v1608_v45 = vmul.f32 %v1606_v15, %v2197_v30  ;;  %1950 = vmatmul.mubr.msk.f32.vlgmr.msra.gmra.mrb[14].mxu0 %vm68_vm4, %v1947_v40 }
  0xab   :  { %1777 = vmatprep.mubr.f32.mxu0 %v1975_v1 }
  0xac   :  { %v1698_v47 = vpop.permute.xlu1 %1697  ;;  %1952 = vmatprep.subr.msk.mxu1 %vm72_vm2, %v1608_v45  ;;  %v1696_v11 = vpop.permute.xlu0 %1695 }
  0xad   :  { %v1699_v48 = vsel %vm816_vm8, %v1696_v11, %v1698_v47  ;;  %v1700_v22 = vsel %vm816_vm8, %v1698_v47, %v1696_v11  ;;  %1953 = vmatpush1.msk.msra.mxu1 %vm72_vm2, %v1607_v44 }
  0xae   :  { %v1701_v30 = vmul.f32 %v1699_v48, %v2214_v37  ;;  %v1702_v54 = vmul.f32 %v1700_v22, %v2221_v41  ;;  %1954 = vmatmul.mubr.msk.f32.vlgmr.msra.gmra.mrb[14].mxu1 %vm68_vm4, %v1951_v46 }
  0xaf   :  { %1871 = vmatprep.mubr.f32.mxu1 %v1975_v1  ;;  %v1959_v1 = vld [vmem:[%s2391_s1 + $0x20] sm:$0xf] }
  0xb0   :  { %v1792_v56 = vpop.permute.xlu1 %1791  ;;  %1956 = vmatprep.subr.msk.mxu0 %vm72_vm2, %v1702_v54  ;;  %v1790_v57 = vpop.permute.xlu0 %1789 }
  0xb1   :  { %v1793_v58 = vsel %vm930_vm9, %v1790_v57, %v1792_v56  ;;  %v1794_v37 = vsel %vm930_vm9, %v1792_v56, %v1790_v57  ;;  %1957 = vmatpush1.msk.msra.mxu0 %vm72_vm2, %v1701_v30 }
  0xb2   :  { %v1795_v41 = vmul.f32 %v1793_v58, %v2240_v49  ;;  %v1796_v53 = vmul.f32 %v1794_v37, %v2243_v52  ;;  %1958 = vmatmul.mubr.msk.f32.vlgmr.msra.gmra.mrb[16].mxu0 %vm68_vm4, %v1955_v55  ;;  %v33_v49 = vadd.f32 %v2012_v0, %v31_v14 }
  0xb4   :  { %1960 = vmatprep.subr.msk.mxu1 %vm72_vm2, %v1796_v53 }
  0xb5   :  { %1961 = vmatpush1.msk.msra.mxu1 %vm72_vm2, %v1795_v41 }
  0xb6   :  { %1962 = vmatmul.mubr.msk.f32.vlgmr.msra.gmra.mrb[16].mxu1 %vm68_vm4, %v1959_v1 }
 0x151   :  { %v145_v59 = vpop.f32.mrb[0].mxu0  ;;  %v259_v52 = vpop.f32.mrb[0].mxu1 }
 0x152   :  { %v147_v60 = vpop.f32.mrb[1].mxu0  ;;  %v261_v61 = vpop.f32.mrb[1].mxu1 }
 0x153   :  { %v152_v62 = vcombine.low %v145_v59, %v147_v60  ;;  %v266_v63 = vcombine.low %v259_v52, %v261_v61 }
 0x155   :  { %v154_v5 = vadd.f32 %v152_v62, %v33_v49  ;;  %v374_v7 = vpop.f32.mrb[2].mxu0 }
 0x156   :  { %v376_v8 = vpop.f32.mrb[3].mxu0 }
 0x157   :  { %v268_v10 = vadd.f32 %v266_v63, %v154_v5  ;;  %v381_v12 = vcombine.low %v374_v7, %v376_v8 }
 0x159   :  { %v383_v13 = vadd.f32 %v381_v12, %v268_v10  ;;  %v488_v16 = vpop.f32.mrb[2].mxu1  ;;  %v573_v26 = vpop.f32.mrb[4].mxu0 }
 0x15a   :  { %v490_v28 = vpop.f32.mrb[3].mxu1  ;;  %v575_v17 = vpop.f32.mrb[5].mxu0 }
 0x15b   :  { %v495_v18 = vcombine.low %v488_v16, %v490_v28  ;;  %v580_v19 = vcombine.low %v573_v26, %v575_v17 }
 0x15d   :  { %v497_v2 = vadd.f32 %v495_v18, %v383_v13  ;;  %v687_v20 = vpop.f32.mrb[4].mxu1 }
 0x15e   :  { %v689_v0 = vpop.f32.mrb[5].mxu1 }
 0x15f   :  { %v582_v25 = vadd.f32 %v580_v19, %v497_v2  ;;  %v694_v27 = vcombine.low %v687_v20, %v689_v0 }
 0x161   :  { %v696_v21 = vadd.f32 %v694_v27, %v582_v25  ;;  %v802_v23 = vpop.f32.mrb[6].mxu0 }
 0x162   :  { %v804_v24 = vpop.f32.mrb[7].mxu0 }
 0x163   :  { %v809_v29 = vcombine.low %v802_v23, %v804_v24 }
 0x165   :  { %v811_v31 = vadd.f32 %v809_v29, %v696_v21  ;;  %v916_v34 = vpop.f32.mrb[6].mxu1 }
 0x166   :  { %v918_v35 = vpop.f32.mrb[7].mxu1 }
 0x167   :  { %v923_v6 = vcombine.low %v916_v34, %v918_v35 }
 0x169   :  { %v925_v32 = vadd.f32 %v923_v6, %v811_v31  ;;  %v1030_v50 = vpop.f32.mrb[8].mxu0 }
 0x16a   :  { %v1032_v33 = vpop.f32.mrb[9].mxu0 }
 0x16b   :  { %v1037_v51 = vcombine.low %v1030_v50, %v1032_v33 }
 0x16d   :  { %v1039_v4 = vadd.f32 %v1037_v51, %v925_v32  ;;  %v1131_v36 = vpop.f32.mrb[8].mxu1 }
 0x16e   :  { %v1133_v39 = vpop.f32.mrb[9].mxu1 }
 0x16f   :  { %1040 = vst [vmem:[%s2393_s4] sm:$0xff] %v1039_v4  ;;  %v1138_v40 = vcombine.low %v1131_v36, %v1133_v39 }
 0x171   :  { %v1140_v42 = vadd.f32 %v1138_v40, %v1043_v38  ;;  %v1225_v43 = vpop.f32.mrb[10].mxu0 }
 0x172   :  { %v1227_v9 = vpop.f32.mrb[11].mxu0 }
 0x173   :  { %v1232_v15 = vcombine.low %v1225_v43, %v1227_v9 }
 0x175   :  { %v1234_v44 = vadd.f32 %v1232_v15, %v1140_v42  ;;  %v1319_v45 = vpop.f32.mrb[10].mxu1 }
 0x176   :  { %v1321_v46 = vpop.f32.mrb[11].mxu1 }
 0x177   :  { %v1326_v47 = vcombine.low %v1319_v45, %v1321_v46 }
 0x179   :  { %v1328_v11 = vadd.f32 %v1326_v47, %v1234_v44  ;;  %v1413_v48 = vpop.f32.mrb[12].mxu0  ;;  %v1497_v22 = vpop.f32.mrb[12].mxu1 }
 0x17a   :  { %v1415_v30 = vpop.f32.mrb[13].mxu0  ;;  %v1499_v54 = vpop.f32.mrb[13].mxu1 }
 0x17b   :  { %v1420_v3 = vcombine.low %v1413_v48, %v1415_v30  ;;  %v1504_v55 = vcombine.low %v1497_v22, %v1499_v54 }
 0x17d   :  { %v1422_v56 = vadd.f32 %v1420_v3, %v1328_v11  ;;  %v1591_v57 = vpop.f32.mrb[14].mxu0 }
 0x17e   :  { %v1593_v58 = vpop.f32.mrb[15].mxu0 }
 0x17f   :  { %v1506_v37 = vadd.f32 %v1504_v55, %v1422_v56  ;;  %v1598_v41 = vcombine.low %v1591_v57, %v1593_v58 }
 0x181   :  { %v1600_v53 = vadd.f32 %v1598_v41, %v1506_v37  ;;  %v1685_v1 = vpop.f32.mrb[14].mxu1 }
 0x182   :  { %v1687_v14 = vpop.f32.mrb[15].mxu1 }
 0x183   :  { %v1692_v59 = vcombine.low %v1685_v1, %v1687_v14 }
 0x185   :  { %v1694_v49 = vadd.f32 %v1692_v59, %v1600_v53  ;;  %v1779_v52 = vpop.f32.mrb[16].mxu0 }
 0x186   :  { %v1781_v60 = vpop.f32.mrb[17].mxu0 }
 0x187   :  { %v1786_v61 = vcombine.low %v1779_v52, %v1781_v60 }
 0x189   :  { %v1788_v62 = vadd.f32 %v1786_v61, %v1694_v49  ;;  %v1873_v63 = vpop.f32.mrb[16].mxu1 }
 0x18a   :  { %v1875_v5 = vpop.f32.mrb[17].mxu1 }
 0x18b   :  { %v1880_v7 = vcombine.low %v1873_v63, %v1875_v5 }
 0x18d   :  { %v1882_v8 = vadd.f32 %v1880_v7, %v1788_v62 }
 0x18f   :  { %1963 = vst [vmem:[%s2393_s4 + $0x8] sm:$0xff] %v1882_v8 }

</bundles_post_ra>
